<compile_context>
chip_gen: v7x
topology: tpu7x:2x2x1
jax: 0.10.0
libtpu: 0.0.40
codegen_flags: <defaults>
</compile_context>

<pallas_src>
import jax
import jax.numpy as jnp
from jax import lax
from jax.experimental import pallas as pl

# ---------------- model hyper-params (small synthetic sizes) ----------------
EMBED_SIZE = 32
HEADS = 4
HEAD_DIM = EMBED_SIZE // HEADS
BATCH = 2
SEQ = 8

_SCALE = 1.0 / (EMBED_SIZE ** 0.5)   # torch divides energy by sqrt(embed_size)


# ------------------------- fused attention + fc_out --------------------------
def _fused_attn_kernel(qkv_ref, bias_ref, wt_ref, b_ref, o_ref):
    # qkv : (3, N, S, E) f32, stacked [q, k, v]  (single input DMA)
    # bias: (N, Sq, Sk)  f32 additive mask (0 kept / -1e20 masked)
    # wt  : (E, E) = fc_out.weight.T  (natural (K, N) layout for the MXU)
    # b   : (1, E)
    # o   : (N*S, E)  (wrapper reshapes back to (N, S, E))
    _, n, s, e = qkv_ref.shape

    # Fold 1/sqrt(embed_size) into q once.  torch scales energy *after*
    # masked_fill; -1e20 and -1e20/sqrt(E) are both annihilated by the softmax
    # max-subtraction, so the results match.
    q = qkv_ref[0] * jnp.float32(_SCALE)           # (N, S, E)
    k = qkv_ref[1]
    v = qkv_ref[2]
    bias = bias_ref[...]                           # (N, Sq, Sk)

    # One hoisted transpose of K -> (N, E, S); per-head RHS slices are then in
    # natural contraction-major layout (no per-head transposes).
    kT = jnp.swapaxes(k, 1, 2)

    # Static (unrolled) loop over heads; heads are static lane/sublane slices.
    # Per-head contexts stay in registers and are concatenated at the end:
    # no VMEM scratch, no masked 8-lane slice stores, no reload.
    ctx_parts = []
    for h in range(HEADS):
        lo = h * HEAD_DIM
        hi = lo + HEAD_DIM
        qh = q[:, :, lo:hi]                        # (N, S, D)
        khT = kT[:, lo:hi, :]                      # (N, D, S)
        vh = v[:, :, lo:hi]                        # (N, S, D)

        # energy = einsum('nqhd,nkhd->nhqk') for this head, plus additive mask
        energy = jnp.einsum("nqd,ndk->nqk", qh, khT,
                            preferred_element_type=jnp.float32) + bias

        # softmax over the key axis (torch dim=3); exact divide (denominator
        # is only (N, S, 1), negligible cost, keeps bit-closeness).
        mx = jnp.max(energy, axis=-1, keepdims=True)
        p = jnp.exp(energy - mx)
        denom = jnp.sum(p, axis=-1, keepdims=True)
        p = p / denom

        ctx_parts.append(jnp.einsum("nqk,nkd->nqd", p, vh,
                                    preferred_element_type=jnp.float32))

    ctx = jnp.concatenate(ctx_parts, axis=-1)      # (N, S, E), registers only
    ctx2d = ctx.reshape(n * s, e)                  # collapse leading dims

    # fc_out: y = ctx @ W.T + b, with W.T passed pre-transposed -> plain
    # (M, K) x (K, N) matmul (contract dim 1 of lhs with dim 0 of rhs).
    y = lax.dot_general(ctx2d, wt_ref[...],
                        dimension_numbers=(((1,), (0,)), ((), ())),
                        preferred_element_type=jnp.float32)
    o_ref[...] = (y + b_ref[...]).astype(o_ref.dtype)


def self_attention_forward(values, keys, query, mask, fc_w, fc_b):
    """values/keys/query: (N, len, embed_size); mask: (N, 1, q_len, k_len) or None.

    Returns (N, q_len, embed_size), matching SelfAttention.forward.
    """
    n, q_len, e = query.shape
    k_len = keys.shape[1]
    assert e == EMBED_SIZE
    # TODO(synk): the stacked-qkv single-DMA path assumes value_len == key_len
    # == query_len (self-attention); cross-attention lengths would need the
    # unstacked 3-input variant.
    assert values.shape == keys.shape == query.shape

    # Additive mask bias (0 keep / -1e20 drop), computed once in the wrapper.
    if mask is None:
        bias = jnp.zeros((n, q_len, k_len), dtype=jnp.float32)
    else:
        if mask.ndim == 4:
            assert mask.shape[1] == 1, "per-head masks are not supported"
        m2 = mask.reshape(n, q_len, k_len)
        bias = jnp.where(m2 == 0, jnp.float32(-1e20), jnp.float32(0.0))

    qkv = jnp.stack([query, keys, values]).astype(jnp.float32)   # (3, N, S, E)
    wt = fc_w.astype(jnp.float32).T                              # (E_in, E_out)
    b2 = fc_b.astype(jnp.float32).reshape(1, e)

    out2d = pl.pallas_call(
        _fused_attn_kernel,
        out_shape=jax.ShapeDtypeStruct((n * q_len, e), jnp.float32),
    )(qkv, bias, wt, b2)
    return out2d.reshape(n, q_len, e)


# ------------------------------- pure-JAX ref --------------------------------
def _reference(values, keys, query, mask, fc_w, fc_b):
    n, q_len, _ = query.shape
    v = values.reshape(n, -1, HEADS, HEAD_DIM)
    k = keys.reshape(n, -1, HEADS, HEAD_DIM)
    q = query.reshape(n, -1, HEADS, HEAD_DIM)
    energy = jnp.einsum("nqhd,nkhd->nhqk", q, k)
    energy = jnp.where(mask == 0, jnp.float32(-1e20), energy)
    attn = jax.nn.softmax(energy / (EMBED_SIZE ** 0.5), axis=3)
    out = jnp.einsum("nhql,nlhd->nqhd", attn, v).reshape(n, q_len, EMBED_SIZE)
    return out @ fc_w.T + fc_b


if __name__ == "__main__":
    key = jax.random.PRNGKey(0)
    kv, kk, kq, kw, kb = jax.random.split(key, 5)

    values = jax.random.normal(kv, (BATCH, SEQ, EMBED_SIZE), dtype=jnp.float32)
    keys_in = jax.random.normal(kk, (BATCH, SEQ, EMBED_SIZE), dtype=jnp.float32)
    query = jax.random.normal(kq, (BATCH, SEQ, EMBED_SIZE), dtype=jnp.float32)

    # causal mask, broadcast over heads: (N, 1, Lq, Lk)
    causal = jnp.tril(jnp.ones((SEQ, SEQ), dtype=jnp.int32))
    mask = jnp.broadcast_to(causal[None, None], (BATCH, 1, SEQ, SEQ))

    # fc_out parameters (torch Linear: y = x @ W.T + b)
    fc_w = jax.random.normal(kw, (EMBED_SIZE, EMBED_SIZE), dtype=jnp.float32) * 0.1
    fc_b = jax.random.normal(kb, (EMBED_SIZE,), dtype=jnp.float32) * 0.1

    out = self_attention_forward(values, keys_in, query, mask, fc_w, fc_b)
    out = jax.block_until_ready(out)

    ref = _reference(values, keys_in, query, mask, fc_w, fc_b)
    assert out.shape == (BATCH, SEQ, EMBED_SIZE)
    assert jnp.allclose(out, ref, atol=1e-4, rtol=1e-4), "mismatch vs reference"

    print("KERNEL_OK")
</pallas_src>

<mosaic_0001>
module attributes {stable_mosaic.version = 11 : i64} {
  func.func @_fused_attn_kernel(%arg0: memref<3x2x8x32xf32, #tpu.memory_space<vmem>>, %arg1: memref<2x8x8xf32, #tpu.memory_space<vmem>>, %arg2: memref<32x32xf32, #tpu.memory_space<vmem>>, %arg3: memref<1x32xf32, #tpu.memory_space<vmem>>, %arg4: memref<16x32xf32, #tpu.memory_space<vmem>>) attributes {dimension_semantics = [], scalar_prefetch = 0 : i64, scratch_operands = 0 : i64, tpu.core_type = #tpu.core_type<tc>} {
    %c0 = arith.constant 0 : index
    %c0_0 = arith.constant 0 : index
    %c0_1 = arith.constant 0 : index
    %c0_2 = arith.constant 0 : index
    %0 = vector.load %arg0[%c0, %c0_0, %c0_1, %c0_2] : memref<3x2x8x32xf32, #tpu.memory_space<vmem>>, vector<1x2x8x32xf32>
    %1 = vector.shape_cast %0 : vector<1x2x8x32xf32> to vector<2x8x32xf32>
    %cst = arith.constant 0.176776692 : f32
    %2 = vector.broadcast %cst : f32 to vector<2x8x32xf32>
    %3 = arith.mulf %1, %2 : vector<2x8x32xf32>
    %c1 = arith.constant 1 : index
    %c0_3 = arith.constant 0 : index
    %c0_4 = arith.constant 0 : index
    %c0_5 = arith.constant 0 : index
    %4 = vector.load %arg0[%c1, %c0_3, %c0_4, %c0_5] : memref<3x2x8x32xf32, #tpu.memory_space<vmem>>, vector<1x2x8x32xf32>
    %5 = vector.shape_cast %4 : vector<1x2x8x32xf32> to vector<2x8x32xf32>
    %c2 = arith.constant 2 : index
    %c0_6 = arith.constant 0 : index
    %c0_7 = arith.constant 0 : index
    %c0_8 = arith.constant 0 : index
    %6 = vector.load %arg0[%c2, %c0_6, %c0_7, %c0_8] : memref<3x2x8x32xf32, #tpu.memory_space<vmem>>, vector<1x2x8x32xf32>
    %7 = vector.shape_cast %6 : vector<1x2x8x32xf32> to vector<2x8x32xf32>
    %c0_9 = arith.constant 0 : index
    %c0_10 = arith.constant 0 : index
    %c0_11 = arith.constant 0 : index
    %8 = vector.load %arg1[%c0_9, %c0_10, %c0_11] : memref<2x8x8xf32, #tpu.memory_space<vmem>>, vector<2x8x8xf32>
    %9 = tpu.transpose %5, [0, 2, 1] : vector<2x8x32xf32> -> vector<2x32x8xf32>
    %10 = vector.extract_strided_slice %3 {offsets = [0, 0, 0], sizes = [2, 8, 8], strides = [1, 1, 1]} : vector<2x8x32xf32> to vector<2x8x8xf32>
    %11 = vector.extract_strided_slice %9 {offsets = [0, 0, 0], sizes = [2, 8, 8], strides = [1, 1, 1]} : vector<2x32x8xf32> to vector<2x8x8xf32>
    %12 = vector.extract_strided_slice %7 {offsets = [0, 0, 0], sizes = [2, 8, 8], strides = [1, 1, 1]} : vector<2x8x32xf32> to vector<2x8x8xf32>
    "tpu.trace_start"() <{level = 10 : i32, message = "nqd,ndk->nqk"}> : () -> ()
    %cst_12 = arith.constant dense<0.000000e+00> : vector<2x8x8xf32>
    %13 = tpu.matmul %10, %11, %cst_12 {dimension_numbers = #tpu.dot_dimension_numbers<[2], [1], [1], [2], [0, 0, 0, 1, 1, 2], [0], [0]>} : vector<2x8x8xf32>, vector<2x8x8xf32>, vector<2x8x8xf32> -> vector<2x8x8xf32>
    "tpu.trace_stop"() : () -> ()
    %14 = arith.addf %13, %8 : vector<2x8x8xf32>
    %cst_13 = arith.constant dense<0xFF800000> : vector<2x8xf32>
    %15 = vector.multi_reduction <maximumf>, %14, %cst_13 [2] : vector<2x8x8xf32> to vector<2x8xf32>
    %16 = vector.shape_cast %15 : vector<2x8xf32> to vector<2x8x1xf32>
    %17 = vector.broadcast %16 : vector<2x8x1xf32> to vector<2x8x8xf32>
    %18 = arith.subf %14, %17 : vector<2x8x8xf32>
    %19 = math.exp %18 : vector<2x8x8xf32>
    %cst_14 = arith.constant dense<0.000000e+00> : vector<2x8xf32>
    %20 = vector.multi_reduction <add>, %19, %cst_14 [2] : vector<2x8x8xf32> to vector<2x8xf32>
    %21 = vector.shape_cast %20 : vector<2x8xf32> to vector<2x8x1xf32>
    %22 = vector.broadcast %21 : vector<2x8x1xf32> to vector<2x8x8xf32>
    %23 = arith.divf %19, %22 : vector<2x8x8xf32>
    "tpu.trace_start"() <{level = 10 : i32, message = "nqk,nkd->nqd"}> : () -> ()
    %cst_15 = arith.constant dense<0.000000e+00> : vector<2x8x8xf32>
    %24 = tpu.matmul %23, %12, %cst_15 {dimension_numbers = #tpu.dot_dimension_numbers<[2], [1], [1], [2], [0, 0, 0, 1, 1, 2], [0], [0]>} : vector<2x8x8xf32>, vector<2x8x8xf32>, vector<2x8x8xf32> -> vector<2x8x8xf32>
    "tpu.trace_stop"() : () -> ()
    %25 = vector.extract_strided_slice %3 {offsets = [0, 0, 8], sizes = [2, 8, 8], strides = [1, 1, 1]} : vector<2x8x32xf32> to vector<2x8x8xf32>
    %26 = vector.extract_strided_slice %9 {offsets = [0, 8, 0], sizes = [2, 8, 8], strides = [1, 1, 1]} : vector<2x32x8xf32> to vector<2x8x8xf32>
    %27 = vector.extract_strided_slice %7 {offsets = [0, 0, 8], sizes = [2, 8, 8], strides = [1, 1, 1]} : vector<2x8x32xf32> to vector<2x8x8xf32>
    "tpu.trace_start"() <{level = 10 : i32, message = "nqd,ndk->nqk"}> : () -> ()
    %cst_16 = arith.constant dense<0.000000e+00> : vector<2x8x8xf32>
    %28 = tpu.matmul %25, %26, %cst_16 {dimension_numbers = #tpu.dot_dimension_numbers<[2], [1], [1], [2], [0, 0, 0, 1, 1, 2], [0], [0]>} : vector<2x8x8xf32>, vector<2x8x8xf32>, vector<2x8x8xf32> -> vector<2x8x8xf32>
    "tpu.trace_stop"() : () -> ()
    %29 = arith.addf %28, %8 : vector<2x8x8xf32>
    %cst_17 = arith.constant dense<0xFF800000> : vector<2x8xf32>
    %30 = vector.multi_reduction <maximumf>, %29, %cst_17 [2] : vector<2x8x8xf32> to vector<2x8xf32>
    %31 = vector.shape_cast %30 : vector<2x8xf32> to vector<2x8x1xf32>
    %32 = vector.broadcast %31 : vector<2x8x1xf32> to vector<2x8x8xf32>
    %33 = arith.subf %29, %32 : vector<2x8x8xf32>
    %34 = math.exp %33 : vector<2x8x8xf32>
    %cst_18 = arith.constant dense<0.000000e+00> : vector<2x8xf32>
    %35 = vector.multi_reduction <add>, %34, %cst_18 [2] : vector<2x8x8xf32> to vector<2x8xf32>
    %36 = vector.shape_cast %35 : vector<2x8xf32> to vector<2x8x1xf32>
    %37 = vector.broadcast %36 : vector<2x8x1xf32> to vector<2x8x8xf32>
    %38 = arith.divf %34, %37 : vector<2x8x8xf32>
    "tpu.trace_start"() <{level = 10 : i32, message = "nqk,nkd->nqd"}> : () -> ()
    %cst_19 = arith.constant dense<0.000000e+00> : vector<2x8x8xf32>
    %39 = tpu.matmul %38, %27, %cst_19 {dimension_numbers = #tpu.dot_dimension_numbers<[2], [1], [1], [2], [0, 0, 0, 1, 1, 2], [0], [0]>} : vector<2x8x8xf32>, vector<2x8x8xf32>, vector<2x8x8xf32> -> vector<2x8x8xf32>
    "tpu.trace_stop"() : () -> ()
    %40 = vector.extract_strided_slice %3 {offsets = [0, 0, 16], sizes = [2, 8, 8], strides = [1, 1, 1]} : vector<2x8x32xf32> to vector<2x8x8xf32>
    %41 = vector.extract_strided_slice %9 {offsets = [0, 16, 0], sizes = [2, 8, 8], strides = [1, 1, 1]} : vector<2x32x8xf32> to vector<2x8x8xf32>
    %42 = vector.extract_strided_slice %7 {offsets = [0, 0, 16], sizes = [2, 8, 8], strides = [1, 1, 1]} : vector<2x8x32xf32> to vector<2x8x8xf32>
    "tpu.trace_start"() <{level = 10 : i32, message = "nqd,ndk->nqk"}> : () -> ()
    %cst_20 = arith.constant dense<0.000000e+00> : vector<2x8x8xf32>
    %43 = tpu.matmul %40, %41, %cst_20 {dimension_numbers = #tpu.dot_dimension_numbers<[2], [1], [1], [2], [0, 0, 0, 1, 1, 2], [0], [0]>} : vector<2x8x8xf32>, vector<2x8x8xf32>, vector<2x8x8xf32> -> vector<2x8x8xf32>
    "tpu.trace_stop"() : () -> ()
    %44 = arith.addf %43, %8 : vector<2x8x8xf32>
    %cst_21 = arith.constant dense<0xFF800000> : vector<2x8xf32>
    %45 = vector.multi_reduction <maximumf>, %44, %cst_21 [2] : vector<2x8x8xf32> to vector<2x8xf32>
    %46 = vector.shape_cast %45 : vector<2x8xf32> to vector<2x8x1xf32>
    %47 = vector.broadcast %46 : vector<2x8x1xf32> to vector<2x8x8xf32>
    %48 = arith.subf %44, %47 : vector<2x8x8xf32>
    %49 = math.exp %48 : vector<2x8x8xf32>
    %cst_22 = arith.constant dense<0.000000e+00> : vector<2x8xf32>
    %50 = vector.multi_reduction <add>, %49, %cst_22 [2] : vector<2x8x8xf32> to vector<2x8xf32>
    %51 = vector.shape_cast %50 : vector<2x8xf32> to vector<2x8x1xf32>
    %52 = vector.broadcast %51 : vector<2x8x1xf32> to vector<2x8x8xf32>
    %53 = arith.divf %49, %52 : vector<2x8x8xf32>
    "tpu.trace_start"() <{level = 10 : i32, message = "nqk,nkd->nqd"}> : () -> ()
    %cst_23 = arith.constant dense<0.000000e+00> : vector<2x8x8xf32>
    %54 = tpu.matmul %53, %42, %cst_23 {dimension_numbers = #tpu.dot_dimension_numbers<[2], [1], [1], [2], [0, 0, 0, 1, 1, 2], [0], [0]>} : vector<2x8x8xf32>, vector<2x8x8xf32>, vector<2x8x8xf32> -> vector<2x8x8xf32>
    "tpu.trace_stop"() : () -> ()
    %55 = vector.extract_strided_slice %3 {offsets = [0, 0, 24], sizes = [2, 8, 8], strides = [1, 1, 1]} : vector<2x8x32xf32> to vector<2x8x8xf32>
    %56 = vector.extract_strided_slice %9 {offsets = [0, 24, 0], sizes = [2, 8, 8], strides = [1, 1, 1]} : vector<2x32x8xf32> to vector<2x8x8xf32>
    %57 = vector.extract_strided_slice %7 {offsets = [0, 0, 24], sizes = [2, 8, 8], strides = [1, 1, 1]} : vector<2x8x32xf32> to vector<2x8x8xf32>
    "tpu.trace_start"() <{level = 10 : i32, message = "nqd,ndk->nqk"}> : () -> ()
    %cst_24 = arith.constant dense<0.000000e+00> : vector<2x8x8xf32>
    %58 = tpu.matmul %55, %56, %cst_24 {dimension_numbers = #tpu.dot_dimension_numbers<[2], [1], [1], [2], [0, 0, 0, 1, 1, 2], [0], [0]>} : vector<2x8x8xf32>, vector<2x8x8xf32>, vector<2x8x8xf32> -> vector<2x8x8xf32>
    "tpu.trace_stop"() : () -> ()
    %59 = arith.addf %58, %8 : vector<2x8x8xf32>
    %cst_25 = arith.constant dense<0xFF800000> : vector<2x8xf32>
    %60 = vector.multi_reduction <maximumf>, %59, %cst_25 [2] : vector<2x8x8xf32> to vector<2x8xf32>
    %61 = vector.shape_cast %60 : vector<2x8xf32> to vector<2x8x1xf32>
    %62 = vector.broadcast %61 : vector<2x8x1xf32> to vector<2x8x8xf32>
    %63 = arith.subf %59, %62 : vector<2x8x8xf32>
    %64 = math.exp %63 : vector<2x8x8xf32>
    %cst_26 = arith.constant dense<0.000000e+00> : vector<2x8xf32>
    %65 = vector.multi_reduction <add>, %64, %cst_26 [2] : vector<2x8x8xf32> to vector<2x8xf32>
    %66 = vector.shape_cast %65 : vector<2x8xf32> to vector<2x8x1xf32>
    %67 = vector.broadcast %66 : vector<2x8x1xf32> to vector<2x8x8xf32>
    %68 = arith.divf %64, %67 : vector<2x8x8xf32>
    "tpu.trace_start"() <{level = 10 : i32, message = "nqk,nkd->nqd"}> : () -> ()
    %cst_27 = arith.constant dense<0.000000e+00> : vector<2x8x8xf32>
    %69 = tpu.matmul %68, %57, %cst_27 {dimension_numbers = #tpu.dot_dimension_numbers<[2], [1], [1], [2], [0, 0, 0, 1, 1, 2], [0], [0]>} : vector<2x8x8xf32>, vector<2x8x8xf32>, vector<2x8x8xf32> -> vector<2x8x8xf32>
    "tpu.trace_stop"() : () -> ()
    %70 = tpu.concatenate %24, %39, %54, %69 in 2 : vector<2x8x8xf32>, vector<2x8x8xf32>, vector<2x8x8xf32>, vector<2x8x8xf32> -> vector<2x8x32xf32>
    %71 = vector.shape_cast %70 : vector<2x8x32xf32> to vector<16x32xf32>
    %c0_28 = arith.constant 0 : index
    %c0_29 = arith.constant 0 : index
    %72 = vector.load %arg2[%c0_28, %c0_29] : memref<32x32xf32, #tpu.memory_space<vmem>>, vector<32x32xf32>
    %cst_30 = arith.constant dense<0.000000e+00> : vector<16x32xf32>
    %73 = tpu.matmul %71, %72, %cst_30 {dimension_numbers = #tpu.dot_dimension_numbers<[1], [0], [0], [1], [0, 0, 1, 1], [], []>} : vector<16x32xf32>, vector<32x32xf32>, vector<16x32xf32> -> vector<16x32xf32>
    %c0_31 = arith.constant 0 : index
    %c0_32 = arith.constant 0 : index
    %74 = vector.load %arg3[%c0_31, %c0_32] : memref<1x32xf32, #tpu.memory_space<vmem>>, vector<1x32xf32>
    %75 = vector.broadcast %74 : vector<1x32xf32> to vector<16x32xf32>
    %76 = arith.addf %73, %75 : vector<16x32xf32>
    %c0_33 = arith.constant 0 : index
    %c0_34 = arith.constant 0 : index
    %77 = vector.load %arg4[%c0_33, %c0_34] : memref<16x32xf32, #tpu.memory_space<vmem>>, vector<16x32xf32>
    tpu.vector_store %arg4[%c0_33, %c0_34], %76 {strides = array<i32>} : memref<16x32xf32, #tpu.memory_space<vmem>>, vector<16x32xf32>,
    return
  }
}

</mosaic_0001>

<bundles_post_ra>
// kernel: tpu_custom_call.1
= control target key start
LH: loop header
LB: loop body
LE: loop exit
PB: predicated region body
PF: predicated region fallthrough
CT: control target
= control target key end

     0   :  { %9 = vsyncpa [#allocation3], 0  ;;  %s2114_s0 = inlined_call_operand.hbm [shape: f32[3,2,8,32], index: 0, kind: input, shape index: {}]   ;;  %s2115_s1 = inlined_call_operand.hbm [shape: f32[2,8,8], index: 1, kind: input, shape index: {}]   ;;  %s2116_s2 = inlined_call_operand.hbm [shape: f32[32,32], index: 2, kind: input, shape index: {}]   ;;  %s2117_s3 = inlined_call_operand.vmem [shape: f32[1,32], index: 3, kind: input, shape index: {}]   ;;  %s2118_s4 = inlined_call_operand.hbm [shape: f32[16,32], index: 4, kind: output, shape index: {}]  }
   0x1   :  { %10 = vsyncpa [#allocation6], 0 }
   0x2   :  { %11 = vsyncpa [#allocation4], 0  ;;  %s1832_s15 = smov [#allocation5]   ;;  %s1833_s17 = smov [#allocation2]  }
   0x3   :  { %s29_s16 = sshll.u32 %s1832_s15, 4  ;;  %s17_s18 = sshll.u32 %s1833_s17, 4  ;;  %s30_s16 = int_to_ptr.vmem [resolvable:$true] %s29_s16  ;;  %s1870_s18 = int_to_ptr.vmem [resolvable:$true] %s17_s18 }
   0x4   :  { %s1738_s21 = scalar_lea.hbm %s2115_s1, 256 }
   0x5   :  { %p1739_p0 = scmp.ne.s32.totalorder %s2115_s1, %s1738_s21  ;;  %p1742_p1 = scmp.lt.u32.totalorder %s1738_s21, %s2115_s1 }
   0x7   :  { %p1744_p2 = pnand %p1742_p1, %p1739_p0 }
   0x9   :  { %1747 = shalt.err (!%p1744_p2)
}
   0xa   :  { %s1748_s26 = scalar_lea.vmem %s30_s16, 256  ;;  %p1753_p4 = scmp.lt.s32.totalorder %s30_s16, %s30_s16 }
   0xb   :  { %p1749_p3 = scmp.ne.s32.totalorder %s30_s16, %s1748_s26  ;;  %p1754_p5 = scmp.lt.s32.totalorder %s1748_s26, %s1748_s26 }
   0xd   :  { %p1755_p6 = por %p1754_p5, %p1753_p4 }
   0xf   :  { %p1756_p7 = pnand %p1755_p6, %p1749_p3 }
  0x11   :  { %1759 = shalt.err (!%p1756_p7)
}
  0x12   :  { %s1834_s27 = smov 128   ;;  %s1835_s28 = smov 8  }
  0x13   :  { %35 = dma.hbm_to_vmem [thread:$0]  %s2115_s1, 256, %s30_s16, [#allocation6], %s1834_s27, %s1834_s27, %s1835_s28  }
  0x14   :  { %s1760_s7 = scalar_lea.hbm %s2114_s0, 768 }
  0x15   :  { %p1761_p8 = scmp.ne.s32.totalorder %s2114_s0, %s1760_s7  ;;  %p1764_p9 = scmp.lt.u32.totalorder %s1760_s7, %s2114_s0 }
  0x17   :  { %p1766_p10 = pnand %p1764_p9, %p1761_p8 }
  0x19   :  { %1769 = shalt.err (!%p1766_p10)
}
  0x1a   :  { %s1770_s12 = scalar_lea.vmem %s1870_s18, 768  ;;  %p1775_p12 = scmp.lt.s32.totalorder %s1870_s18, %s1870_s18 }
  0x1b   :  { %p1771_p11 = scmp.ne.s32.totalorder %s1870_s18, %s1770_s12  ;;  %p1776_p13 = scmp.lt.s32.totalorder %s1770_s12, %s1770_s12 }
  0x1d   :  { %p1777_p0 = por %p1776_p13, %p1775_p12 }
  0x1f   :  { %p1778_p1 = pnand %p1777_p0, %p1771_p11 }
  0x21   :  { %1781 = shalt.err (!%p1778_p1)
}
  0x22   :  { %23 = dma.hbm_to_vmem [thread:$0]  %s2114_s0, 768, %s1870_s18, [#allocation3], %s1834_s27, %s1834_s27, %s1835_s28  }
  0x23   :  { %s1836_s14 = smov [#allocation7]   ;;  %s1782_s19 = scalar_lea.hbm %s2116_s2, 512 }
  0x24   :  { %s41_s15 = sshll.u32 %s1836_s14, 4  ;;  %p1783_p2 = scmp.ne.s32.totalorder %s2116_s2, %s1782_s19  ;;  %s42_s15 = int_to_ptr.vmem [resolvable:$true] %s41_s15 }
  0x25   :  { %p1786_p3 = scmp.lt.u32.totalorder %s1782_s19, %s2116_s2 }
  0x27   :  { %p1788_p4 = pnand %p1786_p3, %p1783_p2 }
  0x29   :  { %1791 = shalt.err (!%p1788_p4)
}
  0x2a   :  { %s1792_s24 = scalar_lea.vmem %s42_s15, 512  ;;  %p1797_p6 = scmp.lt.s32.totalorder %s42_s15, %s42_s15 }
  0x2b   :  { %p1793_p5 = scmp.ne.s32.totalorder %s42_s15, %s1792_s24  ;;  %p1798_p7 = scmp.lt.s32.totalorder %s1792_s24, %s1792_s24 }
  0x2d   :  { %p1799_p8 = por %p1798_p7, %p1797_p6 }
  0x2f   :  { %p1800_p9 = pnand %p1799_p8, %p1793_p5 }
  0x31   :  { %1803 = shalt.err (!%p1800_p9)
}
  0x32   :  { %47 = dma.hbm_to_vmem [thread:$0]  %s2116_s2, 512, %s42_s15, [#allocation6], %s1834_s27, %s1834_s27, %s1835_s28  }
  0x33   :  { %1826 = dma.done.wait [#allocation3], 768  }
  0x34   :  { %1827 = vsyncadd [#allocation3], 4294966528 }
  0x35   :  { %1828 = dma.done.wait [#allocation6], 768  }
  0x36   :  { %1829 = vsyncadd [#allocation6], 4294966528  ;;  %v1837_v0 = vmov 0.0   ;;  %vm1838_vm0 = vmmov 0   ;;  %vm71_vm1 = vcmask 64512   ;;  %v1928_v1 = vld [vmem:[#allocation2 + $0x10] sm:$0xff] }
  0x37   :  { %1594 = vmatprep.subr.mxu1 %v1837_v0  ;;  %1596 = vmatprep.mubr.msk.f32.mxu1 %vm1838_vm0, %v1837_v0  ;;  %v59_v2 = vld [vmem:[#allocation2] sm:$0xff]  ;;  %v60_v4 = vld [vmem:[#allocation2 + $0x8] sm:$0xff]  ;;  %v1935_v5 = vld [vmem:[#allocation2 + $0x18] sm:$0xff]  ;;  %s1839_s2 = smov 120   ;;  %s1840_s25 = smov 112   ;;  %vm1413_vm2 = vcmask 195584  }
  0x38   :  { %1604 = vmatprep.subr.mxu0 %v1837_v0  ;;  %1606 = vmatprep.mubr.msk.f32.mxu0 %vm1838_vm0, %v1837_v0  ;;  %v1932_v3 = vmul.f32 0.17677669, %v59_v2  ;;  %v1939_v6 = vmul.f32 0.17677669, %v60_v4  ;;  %v1954_v7 = vld [vmem:[#allocation5] sm:$0xff]  ;;  %v1957_v11 = vld [vmem:[#allocation5 + $0x8] sm:$0xff] }
  0x39   :  { %1595 = vmatpush3.xpose.msk.msra.mxu1 %vm71_vm1, %v1928_v1  ;;  %472 = vrot.lane.b32.xlu1 %v1935_v5, %s1839_s2  ;;  %v1966_v27 = vld [vmem:[#allocation2 + $0x20] sm:$0xff]  ;;  %v1972_v28 = vld [vmem:[#allocation2 + $0x28] sm:$0xff]  ;;  %s1841_s26 = smov 104   ;;  %s1842_s29 = smov 16   ;;  %vm1410_vm3 = vcmask 130048   ;;  %vm1427_vm4 = vcmask 261120  }
  0x3a   :  { %1599 = vmatprep.subr.mxu1 %v1837_v0  ;;  %1605 = vmatpush3.msra.mxu0 %v1966_v27  ;;  %s1843_s30 = smov 24   ;;  %s1844_s7 = smov [#allocation8]  }
  0x3b   :  { %1614 = vmatprep.subr.mxu0 %v1837_v0  ;;  %s1516_s8 = sshll.u32 %s1844_s7, 4  ;;  %s1517_s8 = int_to_ptr.vmem [resolvable:$true] %s1516_s8 }
  0x3c   :  { %1597 = vmatmul.mubr.msk.f32.vlgmr.msra.gmra.mrb[0].mxu1 %vm71_vm1, %v1932_v3  ;;  %s1804_s9 = scalar_lea.vmem %s1517_s8, 256  ;;  %p1809_p11 = scmp.lt.s32.totalorder %s1517_s8, %s1517_s8 }
  0x3d   :  { %1600 = vmatpush3.xpose.msk.msra.mxu1 %vm71_vm1, %v1935_v5  ;;  %1601 = vmatprep.mubr.msk.f32.mxu1 %vm1838_vm0, %v1837_v0  ;;  %p1805_p10 = scmp.ne.s32.totalorder %s1517_s8, %s1804_s9  ;;  %p1810_p12 = scmp.lt.s32.totalorder %s1804_s9, %s1804_s9 }
  0x3e   :  { %1609 = vmatprep.subr.mxu1 %v1837_v0  ;;  %392 = vrot.lane.b32.xlu1 %v1932_v3, %s1839_s2 }
  0x3f   :  { %p1811_p13 = por %p1810_p12, %p1809_p11 }
  0x40   :  { %1602 = vmatmul.mubr.msk.f32.vlgmr.msra.gmra.mrb[2].mxu1 %vm71_vm1, %v1939_v6 }
  0x41   :  { %1611 = vmatprep.mubr.msk.f32.mxu1 %vm1838_vm0, %v1837_v0  ;;  %1610 = vmatpush3.msra.mxu1 %v1972_v28  ;;  %p1812_p0 = pnand %p1811_p13, %p1805_p10 }
  0x42   :  { %1619 = vmatprep.subr.mxu1 %v1837_v0 }
  0xab   :  { %v473_v29 = vpop.permute.xlu1 %472 }
  0xb0   :  { %v393_v30 = vpop.permute.xlu1 %392 }
 0x10f   :  { %v144_v8 = vpop.f32.mrb[0].mxu1 }
 0x110   :  { %v145_v9 = vadd.f32 %v144_v8, %v1954_v7  ;;  %v1598_v10 = vpop.f32.mrb[1].mxu1 }
 0x112   :  { %v224_v12 = vsel %vm71_vm1, %v145_v9, -inf }
 0x113   :  { %225 = vmax.xlane.f32.xlu0 %v224_v12  ;;  %v220_v13 = vpop.f32.mrb[2].mxu1 }
 0x114   :  { %v221_v14 = vadd.f32 %v220_v13, %v1957_v11  ;;  %v1603_v15 = vpop.f32.mrb[3].mxu1 }
 0x116   :  { %v227_v16 = vsel %vm71_vm1, %v221_v14, -inf }
 0x117   :  { %228 = vmax.xlane.f32.xlu0 %v227_v16 }
 0x12d   :  { %394 = vrot.lane.b32.xlu0 %v1928_v1, %s1839_s2 }
 0x1a0   :  { %v226_v17 = vpop.xlane.xlu0 %225 }
 0x1a1   :  { %v230_v18 = vsub.f32 %v145_v9, %v226_v17 }
 0x1a3   :  { %v232_v19 = vmul.f32 1.442695, %v230_v18 }
 0x1a4   :  { %v229_v20 = vpop.xlane.xlu0 %228 }
 0x1a5   :  { %1706 = vpow2.f32 %v232_v19  ;;  %v231_v21 = vsub.f32 %v221_v14, %v229_v20 }
 0x1a7   :  { %v234_v22 = vmul.f32 1.442695, %v231_v21 }
 0x1a8   :  { %v395_v35 = vpop.permute.xlu0 %394 }
 0x1a9   :  { %1708 = vpow2.f32 %v234_v22 }
 0x1af   :  { %v1707_v23 = vpop.eup %1706 }
 0x1b0   :  { %v236_v24 = vsel %vm71_vm1, %v1707_v23, 0.0 }
 0x1b1   :  { %237 = vadd.xlane.f32.xlu1 %v236_v24 }
 0x1b3   :  { %v1709_v25 = vpop.eup %1708 }
 0x1b4   :  { %v239_v26 = vsel %vm71_vm1, %v1709_v25, 0.0 }
 0x1b5   :  { %240 = vadd.xlane.f32.xlu1 %v239_v26 }
 0x1c6   :  { %470 = vrot.lane.b32.xlu1 %v1939_v6, %s1839_s2 }
 0x23e   :  { %v238_v31 = vpop.xlane.xlu1 %237 }
 0x23f   :  { %1710 = vrcp.f32 %v238_v31 }
 0x242   :  { %v241_v32 = vpop.xlane.xlu1 %240 }
 0x243   :  { %1712 = vrcp.f32 %v241_v32 }
 0x246   :  { %v471_v38 = vpop.permute.xlu1 %470 }
 0x249   :  { %v1711_v33 = vpop.eup %1710 }
 0x24a   :  { %v243_v34 = vmul.f32 %v1711_v33, %v1707_v23 }
 0x24c   :  { %1607 = vmatmul.mubr.msk.f32.vlgmr.msra.gmra.mrb[0].mxu0 %vm71_vm1, %v243_v34 }
 0x24d   :  { %v1713_v36 = vpop.eup %1712  ;;  %1615 = vmatpush3.xpose.msk.msra.mxu0 %vm71_vm1, %v395_v35  ;;  %1616 = vmatprep.mubr.msk.f32.mxu0 %vm1838_vm0, %v1837_v0 }
 0x24e   :  { %v245_v37 = vmul.f32 %v1713_v36, %v1709_v25  ;;  %1624 = vmatprep.subr.mxu0 %v1837_v0 }
 0x250   :  { %1612 = vmatmul.mubr.msk.f32.vlgmr.msra.gmra.mrb[4].mxu1 %vm71_vm1, %v245_v37  ;;  %1617 = vmatmul.mubr.msk.f32.vlgmr.msra.gmra.mrb[2].mxu0 %vm71_vm1, %v393_v30 }
 0x251   :  { %1620 = vmatpush3.xpose.msk.msra.mxu1 %vm71_vm1, %v473_v29  ;;  %1621 = vmatprep.mubr.msk.f32.mxu1 %vm1838_vm0, %v1837_v0 }
 0x252   :  { %1629 = vmatprep.subr.mxu1 %v1837_v0  ;;  %1626 = vmatprep.mubr.msk.f32.mxu0 %vm1838_vm0, %v1837_v0 }
 0x254   :  { %1622 = vmatmul.mubr.msk.f32.vlgmr.msra.gmra.mrb[6].mxu1 %vm71_vm1, %v471_v38 }
 0x255   :  { %1631 = vmatprep.mubr.msk.f32.mxu1 %vm1838_vm0, %v1837_v0 }
 0x31f   :  { %v1992_v39 = vpop.f32.mrb[0].mxu0 }
 0x320   :  { %v1608_v40 = vpop.f32.mrb[1].mxu0 }
 0x323   :  { %v1994_v41 = vpop.f32.mrb[4].mxu1  ;;  %v466_v42 = vpop.f32.mrb[2].mxu0 }
 0x324   :  { %v467_v43 = vadd.f32 %v466_v42, %v1954_v7  ;;  %v1613_v44 = vpop.f32.mrb[5].mxu1  ;;  %v1618_v45 = vpop.f32.mrb[3].mxu0 }
 0x326   :  { %v548_v46 = vsel %vm71_vm1, %v467_v43, -inf }
 0x327   :  { %549 = vmax.xlane.f32.xlu0 %v548_v46  ;;  %v544_v47 = vpop.f32.mrb[6].mxu1 }
 0x328   :  { %v545_v48 = vadd.f32 %v544_v47, %v1957_v11  ;;  %v1623_v49 = vpop.f32.mrb[7].mxu1 }
 0x32a   :  { %v551_v50 = vsel %vm71_vm1, %v545_v48, -inf }
 0x32b   :  { %552 = vmax.xlane.f32.xlu1 %v551_v50 }
 0x33c   :  { %648 = vrot.lane.b32.xlu1 %v1972_v28, %s1839_s2 }
 0x33d   :  { %571 = vrot.lane.b32.xlu0 %v1966_v27, %s1839_s2 }
 0x340   :  { %726 = vrot.lane.b32.xlu1 %v1928_v1, %s1840_s25 }
 0x344   :  { %804 = vrot.lane.b32.xlu1 %v1935_v5, %s1840_s25 }
 0x348   :  { %802 = vrot.lane.b32.xlu1 %v1939_v6, %s1840_s25 }
 0x3b4   :  { %v550_v51 = vpop.xlane.xlu0 %549 }
 0x3b5   :  { %v554_v52 = vsub.f32 %v467_v43, %v550_v51 }
 0x3b7   :  { %v556_v53 = vmul.f32 1.442695, %v554_v52 }
 0x3b8   :  { %v553_v54 = vpop.xlane.xlu1 %552  ;;  %v572_v55 = vpop.permute.xlu0 %571 }
 0x3b9   :  { %1714 = vpow2.f32 %v556_v53  ;;  %v555_v56 = vsub.f32 %v545_v48, %v553_v54  ;;  %1625 = vmatpush3.msra.mxu0 %v572_v55 }
 0x3ba   :  { %1634 = vmatprep.subr.mxu0 %v1837_v0 }
 0x3bb   :  { %v558_v57 = vmul.f32 1.442695, %v555_v56 }
 0x3bc   :  { %v649_v62 = vpop.permute.xlu1 %648 }
 0x3bd   :  { %1716 = vpow2.f32 %v558_v57  ;;  %1630 = vmatpush3.msra.mxu1 %v649_v62 }
 0x3be   :  { %1639 = vmatprep.subr.mxu1 %v1837_v0 }
 0x3c0   :  { %v727_v4 = vpop.permute.xlu1 %726 }
 0x3c3   :  { %v1715_v58 = vpop.eup %1714 }
 0x3c4   :  { %v560_v59 = vsel %vm71_vm1, %v1715_v58, 0.0  ;;  %v805_v10 = vpop.permute.xlu1 %804 }
 0x3c5   :  { %561 = vadd.xlane.f32.xlu0 %v560_v59 }
 0x3c7   :  { %v1717_v60 = vpop.eup %1716 }
 0x3c8   :  { %v563_v61 = vsel %vm71_vm1, %v1717_v60, 0.0  ;;  %v803_v15 = vpop.permute.xlu1 %802 }
 0x3c9   :  { %564 = vadd.xlane.f32.xlu0 %v563_v61 }
 0x3df   :  { %724 = vrot.lane.b32.xlu0 %v1932_v3, %s1840_s25 }
 0x452   :  { %v562_v63 = vpop.xlane.xlu0 %561 }
 0x453   :  { %1718 = vrcp.f32 %v562_v63 }
 0x456   :  { %v565_v2 = vpop.xlane.xlu0 %564 }
 0x457   :  { %1720 = vrcp.f32 %v565_v2 }
 0x45a   :  { %v725_v13 = vpop.permute.xlu0 %724 }
 0x45d   :  { %v1719_v8 = vpop.eup %1718 }
 0x45e   :  { %v567_v9 = vmul.f32 %v1719_v8, %v1715_v58 }
 0x460   :  { %1627 = vmatmul.mubr.msk.f32.vlgmr.msra.gmra.mrb[4].mxu0 %vm71_vm1, %v567_v9 }
 0x461   :  { %v1721_v12 = vpop.eup %1720  ;;  %1635 = vmatpush3.xpose.msk.msra.mxu0 %vm71_vm1, %v727_v4  ;;  %1636 = vmatprep.mubr.msk.f32.mxu0 %vm1838_vm0, %v1837_v0 }
 0x462   :  { %v569_v14 = vmul.f32 %v1721_v12, %v1717_v60  ;;  %1644 = vmatprep.subr.mxu0 %v1837_v0 }
 0x464   :  { %1632 = vmatmul.mubr.msk.f32.vlgmr.msra.gmra.mrb[8].mxu1 %vm71_vm1, %v569_v14  ;;  %1637 = vmatmul.mubr.msk.f32.vlgmr.msra.gmra.mrb[6].mxu0 %vm71_vm1, %v725_v13 }
 0x465   :  { %1640 = vmatpush3.xpose.msk.msra.mxu1 %vm71_vm1, %v805_v10  ;;  %1641 = vmatprep.mubr.msk.f32.mxu1 %vm1838_vm0, %v1837_v0 }
 0x466   :  { %1649 = vmatprep.subr.mxu1 %v1837_v0  ;;  %1646 = vmatprep.mubr.msk.f32.mxu0 %vm1838_vm0, %v1837_v0 }
 0x468   :  { %1642 = vmatmul.mubr.msk.f32.vlgmr.msra.gmra.mrb[10].mxu1 %vm71_vm1, %v803_v15 }
 0x469   :  { %1651 = vmatprep.mubr.msk.f32.mxu1 %vm1838_vm0, %v1837_v0 }
 0x533   :  { %v2032_v16 = vpop.f32.mrb[4].mxu0 }
 0x534   :  { %v1628_v17 = vpop.f32.mrb[5].mxu0 }
 0x537   :  { %v2034_v18 = vpop.f32.mrb[8].mxu1  ;;  %v798_v19 = vpop.f32.mrb[6].mxu0 }
 0x538   :  { %v799_v20 = vadd.f32 %v798_v19, %v1954_v7  ;;  %v1633_v21 = vpop.f32.mrb[9].mxu1  ;;  %v1638_v22 = vpop.f32.mrb[7].mxu0  ;;  %v1416_v19 = vld [vmem:[#allocation7] sm:$0xff] }
 0x539   :  { %v1419_v22 = vld [vmem:[#allocation7 + $0x18] sm:$0xff] }
 0x53a   :  { %v880_v23 = vsel %vm71_vm1, %v799_v20, -inf }
 0x53b   :  { %881 = vmax.xlane.f32.xlu0 %v880_v23  ;;  %v876_v24 = vpop.f32.mrb[10].mxu1 }
 0x53c   :  { %v877_v25 = vadd.f32 %v876_v24, %v1957_v11  ;;  %v1643_v26 = vpop.f32.mrb[11].mxu1 }
 0x53e   :  { %v883_v29 = vsel %vm71_vm1, %v877_v25, -inf }
 0x53f   :  { %884 = vmax.xlane.f32.xlu1 %v883_v29 }
 0x550   :  { %978 = vrot.lane.b32.xlu1 %v1972_v28, %s1840_s25 }
 0x551   :  { %902 = vrot.lane.b32.xlu0 %v1966_v27, %s1840_s25 }
 0x554   :  { %1056 = vrot.lane.b32.xlu1 %v1928_v1, %s1841_s26 }
 0x558   :  { %1134 = vrot.lane.b32.xlu1 %v1935_v5, %s1841_s26 }
 0x55c   :  { %1132 = vrot.lane.b32.xlu1 %v1939_v6, %s1841_s26 }
 0x5c8   :  { %v882_v30 = vpop.xlane.xlu0 %881 }
 0x5c9   :  { %v886_v31 = vsub.f32 %v799_v20, %v882_v30  ;;  %v1417_v20 = vld [vmem:[#allocation7 + $0x8] sm:$0xff] }
 0x5ca   :  { %v1685_v21 = vpack.c.bf16 %v1417_v20, %v1416_v19 }
 0x5cb   :  { %v888_v32 = vmul.f32 1.442695, %v886_v31 }
 0x5cc   :  { %v885_v33 = vpop.xlane.xlu1 %884  ;;  %v903_v34 = vpop.permute.xlu0 %902 }
 0x5cd   :  { %1722 = vpow2.f32 %v888_v32  ;;  %v887_v35 = vsub.f32 %v877_v25, %v885_v33  ;;  %1645 = vmatpush3.msra.mxu0 %v903_v34 }
 0x5ce   :  { %1654 = vmatprep.subr.mxu0 %v1837_v0 }
 0x5cf   :  { %v890_v36 = vmul.f32 1.442695, %v887_v35 }
 0x5d0   :  { %v979_v6 = vpop.permute.xlu1 %978 }
 0x5d1   :  { %1724 = vpow2.f32 %v890_v36  ;;  %1650 = vmatpush3.msra.mxu1 %v979_v6 }
 0x5d2   :  { %1659 = vmatprep.subr.mxu1 %v1837_v0 }
 0x5d4   :  { %v1057_v43 = vpop.permute.xlu1 %1056 }
 0x5d7   :  { %v1723_v37 = vpop.eup %1722 }
 0x5d8   :  { %v892_v1 = vsel %vm71_vm1, %v1723_v37, 0.0  ;;  %v1135_v46 = vpop.permute.xlu1 %1134 }
 0x5d9   :  { %893 = vadd.xlane.f32.xlu0 %v892_v1 }
 0x5db   :  { %v1725_v5 = vpop.eup %1724 }
 0x5dc   :  { %v895_v38 = vsel %vm71_vm1, %v1725_v5, 0.0 }
 0x5dd   :  { %896 = vadd.xlane.f32.xlu0 %v895_v38 }
 0x5f3   :  { %1054 = vrot.lane.b32.xlu0 %v1932_v3, %s1841_s26  ;;  %v1133_v3 = vpop.permute.xlu1 %1132 }
 0x666   :  { %v894_v40 = vpop.xlane.xlu0 %893 }
 0x667   :  { %1726 = vrcp.f32 %v894_v40 }
 0x66a   :  { %v897_v42 = vpop.xlane.xlu0 %896 }
 0x66b   :  { %1728 = vrcp.f32 %v897_v42 }
 0x66e   :  { %v1055_v48 = vpop.permute.xlu0 %1054 }
 0x671   :  { %v1727_v44 = vpop.eup %1726 }
 0x672   :  { %v899_v45 = vmul.f32 %v1727_v44, %v1723_v37 }
 0x674   :  { %1647 = vmatmul.mubr.msk.f32.vlgmr.msra.gmra.mrb[8].mxu0 %vm71_vm1, %v899_v45 }
 0x675   :  { %v1729_v47 = vpop.eup %1728  ;;  %1655 = vmatpush3.xpose.msk.msra.mxu0 %vm71_vm1, %v1057_v43  ;;  %1656 = vmatprep.mubr.msk.f32.mxu0 %vm1838_vm0, %v1837_v0 }
 0x676   :  { %v901_v49 = vmul.f32 %v1729_v47, %v1725_v5  ;;  %1664 = vmatprep.subr.mxu0 %v1837_v0 }
 0x678   :  { %1652 = vmatmul.mubr.msk.f32.vlgmr.msra.gmra.mrb[12].mxu1 %vm71_vm1, %v901_v49  ;;  %1657 = vmatmul.mubr.msk.f32.vlgmr.msra.gmra.mrb[10].mxu0 %vm71_vm1, %v1055_v48 }
 0x679   :  { %1660 = vmatpush3.xpose.msk.msra.mxu1 %vm71_vm1, %v1135_v46  ;;  %1661 = vmatprep.mubr.msk.f32.mxu1 %vm1838_vm0, %v1837_v0 }
 0x67a   :  { %1666 = vmatprep.mubr.msk.f32.mxu0 %vm1838_vm0, %v1837_v0  ;;  %1669 = vmatprep.subr.mxu1 %v1837_v0 }
 0x67c   :  { %1662 = vmatmul.mubr.msk.f32.vlgmr.msra.gmra.mrb[14].mxu1 %vm71_vm1, %v1133_v3 }
 0x67d   :  { %1671 = vmatprep.mubr.msk.f32.mxu1 %vm1838_vm0, %v1837_v0 }
 0x747   :  { %v974_v50 = vpop.f32.mrb[8].mxu0 }
 0x748   :  { %v1648_v51 = vpop.f32.mrb[9].mxu0 }
 0x74b   :  { %v1050_v52 = vpop.f32.mrb[12].mxu1  ;;  %v1128_v53 = vpop.f32.mrb[10].mxu0 }
 0x74c   :  { %v1129_v54 = vadd.f32 %v1128_v53, %v1954_v7  ;;  %v1653_v55 = vpop.f32.mrb[13].mxu1  ;;  %v1658_v56 = vpop.f32.mrb[11].mxu0 }
 0x74e   :  { %v1210_v57 = vsel %vm71_vm1, %v1129_v54, -inf }
 0x74f   :  { %1211 = vmax.xlane.f32.xlu0 %v1210_v57  ;;  %v1206_v58 = vpop.f32.mrb[14].mxu1 }
 0x750   :  { %v1207_v59 = vadd.f32 %v1206_v58, %v1957_v11  ;;  %v1663_v60 = vpop.f32.mrb[15].mxu1 }
 0x752   :  { %v1213_v61 = vsel %vm71_vm1, %v1207_v59, -inf }
 0x753   :  { %1214 = vmax.xlane.f32.xlu1 %v1213_v61 }
 0x764   :  { %1308 = vrot.lane.b32.xlu1 %v1972_v28, %s1841_s26 }
 0x768   :  { %1386 = vrot.lane.b32.xlu1 %v2032_v16, %s1835_s28 }
 0x76c   :  { %1388 = vrot.lane.b32.xlu1 %v2034_v18, %s1835_s28 }
 0x770   :  { %1396 = vrot.lane.b32.xlu1 %v1050_v52, %s1842_s29 }
 0x7dc   :  { %v1212_v0 = vpop.xlane.xlu0 %1211 }
 0x7dd   :  { %v1216_v7 = vsub.f32 %v1129_v54, %v1212_v0 }
 0x7df   :  { %v1218_v62 = vmul.f32 1.442695, %v1216_v7 }
 0x7e0   :  { %v1215_v63 = vpop.xlane.xlu1 %1214 }
 0x7e1   :  { %1730 = vpow2.f32 %v1218_v62  ;;  %v1217_v11 = vsub.f32 %v1207_v59, %v1215_v63 }
 0x7e3   :  { %v1220_v2 = vmul.f32 1.442695, %v1217_v11 }
 0x7e4   :  { %v1309_v4 = vpop.permute.xlu1 %1308 }
 0x7e5   :  { %1732 = vpow2.f32 %v1220_v2  ;;  %1670 = vmatpush3.msra.mxu1 %v1309_v4 }
 0x7e8   :  { %v1387_v30 = vpop.permute.xlu1 %1386 }
 0x7e9   :  { %v1408_v33 = vsel %vm71_vm1, %v1992_v39, %v1387_v30  ;;  %v1553_v39 = vld [vmem:[%s2117_s3] ss:$0 sm:$0xff] }
 0x7eb   :  { %v1731_v8 = vpop.eup %1730 }
 0x7ec   :  { %v1222_v28 = vsel %vm71_vm1, %v1731_v8, 0.0  ;;  %v1389_v31 = vpop.permute.xlu1 %1388 }
 0x7ed   :  { %1223 = vadd.xlane.f32.xlu0 %v1222_v28  ;;  %v1409_v1 = vsel %vm71_vm1, %v1994_v41, %v1389_v31 }
 0x7ef   :  { %v1733_v9 = vpop.eup %1732 }
 0x7f0   :  { %v1225_v10 = vsel %vm71_vm1, %v1733_v9, 0.0  ;;  %v1397_v34 = vpop.permute.xlu1 %1396 }
 0x7f1   :  { %1226 = vadd.xlane.f32.xlu0 %v1225_v10  ;;  %v1412_v5 = vsel %vm1410_vm3, %v1409_v1, %v1397_v34 }
 0x807   :  { %1232 = vrot.lane.b32.xlu0 %v1966_v27, %s1841_s26  ;;  %v1418_v27 = vld [vmem:[#allocation7 + $0x10] sm:$0xff] }
 0x808   :  { %v1689_v23 = vpack.c.bf16 %v1419_v22, %v1418_v27 }
 0x80b   :  { %1394 = vrot.lane.b32.xlu0 %v974_v50, %s1842_s29 }
 0x87a   :  { %v1224_v12 = vpop.xlane.xlu0 %1223 }
 0x87b   :  { %1734 = vrcp.f32 %v1224_v12 }
 0x87e   :  { %v1227_v13 = vpop.xlane.xlu0 %1226 }
 0x87f   :  { %1736 = vrcp.f32 %v1227_v13 }
 0x882   :  { %v1233_v14 = vpop.permute.xlu0 %1232 }
 0x883   :  { %1665 = vmatpush3.msra.mxu0 %v1233_v14 }
 0x884   :  { %1686 = vmatprep.subr.bf16.mxu0 %v1685_v21 }
 0x885   :  { %v1735_v15 = vpop.eup %1734 }
 0x886   :  { %v1229_v16 = vmul.f32 %v1735_v15, %v1731_v8  ;;  %v1395_v32 = vpop.permute.xlu0 %1394 }
 0x887   :  { %v1411_v35 = vsel %vm1410_vm3, %v1408_v33, %v1395_v32 }
 0x888   :  { %1667 = vmatmul.mubr.msk.f32.vlgmr.msra.gmra.mrb[12].mxu0 %vm71_vm1, %v1229_v16 }
 0x889   :  { %v1737_v17 = vpop.eup %1736  ;;  %1688 = vmatpush3.bf16.msra.mxu0 %v1685_v21 }
 0x88a   :  { %v1231_v18 = vmul.f32 %v1737_v17, %v1733_v9  ;;  %1690 = vmatprep.subr.bf16.mxu0 %v1689_v23 }
 0x88c   :  { %1672 = vmatmul.mubr.msk.f32.vlgmr.msra.gmra.mrb[16].mxu1 %vm71_vm1, %v1231_v18 }
 0x88d   :  { %1692 = vmatpush3.bf16.msra.mxu0 %v1689_v23 }
 0x95b   :  { %v1304_v24 = vpop.f32.mrb[12].mxu0 }
 0x95c   :  { %1402 = vrot.lane.b32.xlu0 %v1304_v24, %s1843_s30  ;;  %v1668_v25 = vpop.f32.mrb[13].mxu0 }
 0x95f   :  { %v1380_v26 = vpop.f32.mrb[16].mxu1 }
 0x960   :  { %1404 = vrot.lane.b32.xlu1 %v1380_v26, %s1843_s30  ;;  %v1673_v29 = vpop.f32.mrb[17].mxu1 }
 0x9ce   :  { %v1403_v36 = vpop.permute.xlu0 %1402 }
 0x9cf   :  { %v1414_v37 = vsel %vm1413_vm2, %v1411_v35, %v1403_v36 }
 0x9d0   :  { %1682 = vmatprep.mubr.msk.f32.mxu0 %vm1427_vm4, %v1414_v37 }
 0x9d2   :  { %v1405_v38 = vpop.permute.xlu1 %1404 }
 0x9d3   :  { %v1415_v6 = vsel %vm1413_vm2, %v1412_v5, %v1405_v38 }
 0x9d4   :  { %1683 = vmatmul.mubr.msk.f32.vlgmr.msra.gmra.mrb[14].mxu0 %vm1427_vm4, %v1415_v6 }
 0xaa7   :  { %v1684_v40 = vpop.f32.mrb[14].mxu0 }
 0xaa8   :  { %v1506_v42 = vadd.f32 %v1684_v40, %v1553_v39  ;;  %v1500_v43 = vpop.f32.mrb[15].mxu0 }
 0xaa9   :  { %v1501_v44 = vadd.f32 %v1553_v39, %v1500_v43 }
 0xaaa   :  { %1510 = vst.msk [vmem:[#allocation8 + $0x8] sm:$0xff] %vm1427_vm4, %v1506_v42 }
 0xaab   :  { %1509 = vst.msk [vmem:[#allocation8] sm:$0xff] %vm1427_vm4, %v1501_v44 }
 0xaac   :  { %1815 = shalt.err (!%p1812_p0)
}
 0xaad   :  { %s1816_s11 = scalar_lea.hbm %s2118_s4, 256 }
 0xaae   :  { %p1817_p1 = scmp.ne.s32.totalorder %s2118_s4, %s1816_s11  ;;  %p1820_p2 = scmp.lt.u32.totalorder %s1816_s11, %s2118_s4 }
 0xab0   :  { %p1822_p3 = pnand %p1820_p2, %p1817_p1 }
 0xab2   :  { %1825 = shalt.err (!%p1822_p3)
}
 0xab3   :  { %1522 = dma.vmem_to_hbm [thread:$0]  %s1517_s8, 256, %s2118_s4, [#allocation4], %s1834_s27, %s1834_s27, %s1835_s28  }
 0xab4   :  { %1830 = dma.done.wait [#allocation4], 256  }
 0xab5   :  { %1831 = vsyncadd [#allocation4], 4294967040 }
 0xab6   :  { %1526 = vsyncpa [#allocation3], 1 }
 0xab7   :  { %1527 = vsyncpa [#allocation6], 1 }
 0xab8   :  { %1528 = vsyncpa [#allocation4], 1 }

</bundles_post_ra>
